<compile_context>
chip_gen: v5e
topology: v5e:2x2
jax: 0.10.0
libtpu: 0.0.40
codegen_flags: <defaults>
</compile_context>

<pallas_src>
import functools

import numpy as np
import jax
import jax.numpy as jnp
from jax.experimental import pallas as pl
from jax.experimental.pallas import tpu as pltpu


def _pad_kernel(x_ref, o_ref, *, pads, value):
    """Write one padded block.

    Last (lane) dim padding: widen x in-register by concatenating the
    constant halos, so the interior store is full-lane-width and unmasked.
    Remaining padded dims: constant halo slabs spanning the full padded lane
    width (lane-dense stores), then one lane-aligned interior store of x.
    """
    out_shape = o_ref.shape
    nd = len(out_shape)
    x = x_ref[...]

    # Lane axis: build the lane-padded tile in registers (XLU shifts are on a
    # different issue slot than vector stores, so this frees the store path).
    lo_l, hi_l = pads[-1]
    if lo_l > 0 or hi_l > 0:
        parts = []
        if lo_l > 0:
            parts.append(jnp.full(x.shape[:-1] + (lo_l,), value, x.dtype))
        parts.append(x)
        if hi_l > 0:
            parts.append(jnp.full(x.shape[:-1] + (hi_l,), value, x.dtype))
        x = jnp.concatenate(parts, axis=-1)

    def slab_idx(d, start, size):
        return tuple(
            pl.ds(start, size) if i == d else pl.ds(0, out_shape[i])
            for i in range(nd))

    # Constant halo slabs for the non-lane padded dims.  Each slab spans the
    # full (padded) lane width -> lane-dense, unmasked stores.  Corners of
    # different slabs overlap slightly (same constant) — harmless.
    for d in range(nd - 1):
        lo, hi = pads[d]
        if lo > 0:
            shape = tuple(lo if i == d else out_shape[i] for i in range(nd))
            o_ref[slab_idx(d, 0, lo)] = jnp.full(shape, value, o_ref.dtype)
        if hi > 0:
            shape = tuple(hi if i == d else out_shape[i] for i in range(nd))
            o_ref[slab_idx(d, out_shape[d] - hi, hi)] = jnp.full(
                shape, value, o_ref.dtype)

    # Single store of the (lane-widened) input: lane offset 0, full lane width.
    idx = tuple(pl.ds(pads[d][0], x.shape[d]) for d in range(nd - 1)) + (
        pl.ds(0, out_shape[-1]),)
    o_ref[idx] = x


def constant_pad_nd(x, pad, value=0.0):
    """Pallas equivalent of torch.ops.aten.constant_pad_nd.default(x, pad, value)."""
    ndim = x.ndim
    pad = tuple(int(p) for p in pad)
    assert len(pad) % 2 == 0 and len(pad) // 2 <= ndim

    # Pad value is baked into the kernel as a trace-time constant.
    # TODO(synk): support a traced (jit-abstract) pad value via an SMEM scalar.
    if isinstance(value, (jax.Array, np.ndarray, np.generic)):
        value = np.asarray(value).item()

    pads = [(0, 0)] * ndim
    for i in range(len(pad) // 2):
        d = ndim - 1 - i
        pads[d] = (pad[2 * i], pad[2 * i + 1])

    # Negative padding (cropping): apply via plain slicing, keep >=0 pads.
    if any(lo < 0 or hi < 0 for lo, hi in pads):
        slices, pos = [], []
        for d, (lo, hi) in enumerate(pads):
            start = -lo if lo < 0 else 0
            stop = x.shape[d] + hi if hi < 0 else x.shape[d]
            slices.append(slice(start, stop))
            pos.append((max(lo, 0), max(hi, 0)))
        x = x[tuple(slices)]
        pads = pos

    out_shape = tuple(x.shape[d] + pads[d][0] + pads[d][1] for d in range(ndim))

    if all(p == (0, 0) for p in pads):
        return x
    if x.size == 0:
        return jnp.full(out_shape, value, x.dtype)

    # Canonicalize to (B, padded core..., T):
    #   B = flattened leading dims with zero pad (gridded / parallel axis)
    #   T = flattened trailing dims with zero pad (lane-dense last dim)
    first = min(d for d in range(ndim) if pads[d] != (0, 0))
    last = max(d for d in range(ndim) if pads[d] != (0, 0))

    lead = x.shape[:first]
    trail = x.shape[last + 1:]
    B = int(np.prod(lead, dtype=np.int64)) if lead else 1
    T = int(np.prod(trail, dtype=np.int64)) if trail else None

    core_in = tuple(x.shape[first:last + 1])
    core_pads = tuple(pads[first:last + 1])
    core_out = tuple(s + lo + hi for s, (lo, hi) in zip(core_in, core_pads))

    kin_shape = (B,) + core_in + ((T,) if T is not None else ())
    kout_shape = (B,) + core_out + ((T,) if T is not None else ())
    kpads = ((0, 0),) + core_pads + (((0, 0),) if T is not None else ())

    # If the kernel view is 2-D, B would sit on the sublane axis; insert a
    # singleton so B stays an unconstrained grid axis.
    if len(kin_shape) == 2:
        kin_shape = (kin_shape[0], 1, kin_shape[1])
        kout_shape = (kout_shape[0], 1, kout_shape[1])
        kpads = (kpads[0], (0, 0), kpads[1])

    xk = x.reshape(kin_shape)

    itemsize = np.dtype(x.dtype).itemsize
    in_per_b = int(np.prod(kin_shape[1:], dtype=np.int64)) * itemsize
    out_per_b = int(np.prod(kout_shape[1:], dtype=np.int64)) * itemsize
    per_b = in_per_b + out_per_b

    # Generation-aware per-step (in+out) budget.  Large tiles amortize the
    # ~0.35us/step overhead (matters most on v7x: fast HBM, only 64 MiB VMEM);
    # vmem_cap//8 keeps double-buffered tiles + concat temporaries comfortable.
    try:
        vmem_cap = int(pltpu.get_tpu_info().vmem_capacity_bytes)
    except Exception:  # not queryable at trace time -> conservative (v7x)
        vmem_cap = 64 * 1024 * 1024
    budget = min(16 * 1024 * 1024, vmem_cap // 8)

    bb = max(1, min(B, budget // max(per_b, 1)))
    # Keep >= 2 grid steps when possible so the "parallel" axis actually
    # shards across both TensorCores on v7x megacore.
    if bb >= B and B >= 2:
        bb = pl.cdiv(B, 2)
    grid = (pl.cdiv(B, bb),)

    # Explicit scoped-VMEM limit: double-buffered in/out tiles + one output
    # tile for the in-register concatenate temporary + headroom, capped safely
    # below physical VMEM.
    step_bytes = bb * per_b
    needed = 2 * step_bytes + bb * out_per_b + (8 << 20)
    vmem_limit = max(32 << 20, needed)
    vmem_limit = min(vmem_limit, max(vmem_cap - (8 << 20), 32 << 20))
    # TODO(synk): if a single B-slice (bb == 1) still exceeds VMEM, the padded
    # core (sublane) dims themselves would also need tiling; not implemented.
    # TODO(synk): for sub-32-bit dtypes with sublane-misaligned pads, a
    # pltpu.bitcast-to-u32 interior copy would avoid packed-row partial stores.

    nrest = len(kin_shape) - 1
    in_spec = pl.BlockSpec((bb,) + kin_shape[1:],
                           lambda i: (i,) + (0,) * nrest)
    out_spec = pl.BlockSpec((bb,) + kout_shape[1:],
                            lambda i: (i,) + (0,) * nrest)

    kernel = functools.partial(_pad_kernel, pads=kpads, value=value)

    in_bytes = int(np.prod(kin_shape, dtype=np.int64)) * itemsize
    out_bytes = int(np.prod(kout_shape, dtype=np.int64)) * itemsize

    outk = pl.pallas_call(
        kernel,
        out_shape=jax.ShapeDtypeStruct(kout_shape, x.dtype),
        grid=grid,
        in_specs=[in_spec],
        out_specs=out_spec,
        compiler_params=pltpu.CompilerParams(
            dimension_semantics=("parallel",),
            vmem_limit_bytes=int(vmem_limit),
        ),
        cost_estimate=pl.CostEstimate(
            flops=0, transcendentals=0,
            bytes_accessed=in_bytes + out_bytes),
    )(xk)

    return outk.reshape(out_shape)


if __name__ == "__main__":
    key = jax.random.PRNGKey(0)
    x = jax.random.normal(key, (2, 4, 16, 16), dtype=jnp.float32)

    # Case 1: pad W and H (lane dim padded -> in-register widen path).
    out = constant_pad_nd(x, (1, 2, 3, 4), 1.5)
    out = jax.block_until_ready(out)
    ref = jnp.pad(x, ((0, 0), (0, 0), (3, 4), (1, 2)), constant_values=1.5)
    assert out.shape == (2, 4, 23, 19), out.shape
    assert out.dtype == x.dtype
    assert jnp.allclose(out, ref), "case 1 mismatch vs reference"

    # Case 2: negative pad (crop) on W + positive pad on C (lane-dense trail).
    out2 = constant_pad_nd(x, (-2, -3, 0, 0, 1, 1), 0.25)
    out2 = jax.block_until_ready(out2)
    ref2 = jnp.pad(x[:, :, :, 2:13], ((0, 0), (1, 1), (0, 0), (0, 0)),
                   constant_values=0.25)
    assert out2.shape == ref2.shape, (out2.shape, ref2.shape)
    assert jnp.allclose(out2, ref2), "case 2 mismatch vs reference"

    # Case 3: integer dtype with exact pad value (halo path).
    xi = jnp.arange(2 * 4 * 8 * 8, dtype=jnp.int32).reshape(2, 4, 8, 8)
    out3 = constant_pad_nd(xi, (0, 0, 2, 1), 7)
    out3 = jax.block_until_ready(out3)
    ref3 = jnp.pad(xi, ((0, 0), (0, 0), (2, 1), (0, 0)), constant_values=7)
    assert jnp.array_equal(out3, ref3), "case 3 mismatch vs reference"

    # Case 4: non-divisible leading batch (ragged last grid block) + lane pad.
    x4 = jax.random.normal(key, (3, 5, 16, 16), dtype=jnp.float32)
    out4 = constant_pad_nd(x4, (2, 1, 1, 3), -0.5)
    out4 = jax.block_until_ready(out4)
    ref4 = jnp.pad(x4, ((0, 0), (0, 0), (1, 3), (2, 1)), constant_values=-0.5)
    assert jnp.allclose(out4, ref4), "case 4 mismatch vs reference"

    # Case 5: pad the leading (batch) dim itself (B == 1, trailing-dense path).
    out5 = constant_pad_nd(x, (0, 0, 0, 0, 0, 0, 1, 1), -2.0)
    out5 = jax.block_until_ready(out5)
    ref5 = jnp.pad(x, ((1, 1), (0, 0), (0, 0), (0, 0)), constant_values=-2.0)
    assert jnp.allclose(out5, ref5), "case 5 mismatch vs reference"

    print("KERNEL_OK")
</pallas_src>

<mosaic_0001>
module attributes {stable_mosaic.version = 11 : i64} {
  func.func @_pad_kernel(%arg0: i32, %arg1: memref<4x16x16xf32, #tpu.memory_space<vmem>>, %arg2: memref<4x23x19xf32, #tpu.memory_space<vmem>>) attributes {dimension_semantics = [#tpu.dimension_semantics<parallel>], iteration_bounds = array<i64: 2>, scalar_prefetch = 0 : i64, scratch_operands = 0 : i64, tpu.core_type = #tpu.core_type<tc>, window_params = [{transform_indices = @transform_0, window_bounds = array<i64: 4, 16, 16>}, {transform_indices = @transform_1, window_bounds = array<i64: 4, 23, 19>}]} {
    %c0 = arith.constant 0 : index
    %c0_0 = arith.constant 0 : index
    %c0_1 = arith.constant 0 : index
    %0 = vector.load %arg1[%c0, %c0_0, %c0_1] : memref<4x16x16xf32, #tpu.memory_space<vmem>>, vector<4x16x16xf32>
    %cst = arith.constant 1.500000e+00 : f32
    %1 = vector.broadcast %cst : f32 to vector<4x16x1xf32>
    %cst_2 = arith.constant 1.500000e+00 : f32
    %2 = vector.broadcast %cst_2 : f32 to vector<4x16x2xf32>
    %3 = tpu.concatenate %1, %0, %2 in 2 : vector<4x16x1xf32>, vector<4x16x16xf32>, vector<4x16x2xf32> -> vector<4x16x19xf32>
    %cst_3 = arith.constant 1.500000e+00 : f32
    %4 = vector.broadcast %cst_3 : f32 to vector<4x3x19xf32>
    %c0_4 = arith.constant 0 : index
    %c0_5 = arith.constant 0 : index
    %c0_6 = arith.constant 0 : index
    %5 = vector.load %arg2[%c0_4, %c0_5, %c0_6] : memref<4x23x19xf32, #tpu.memory_space<vmem>>, vector<4x3x19xf32>
    tpu.vector_store %arg2[%c0_4, %c0_5, %c0_6], %4 {strides = array<i32>} : memref<4x23x19xf32, #tpu.memory_space<vmem>>, vector<4x3x19xf32>,
    %cst_7 = arith.constant 1.500000e+00 : f32
    %6 = vector.broadcast %cst_7 : f32 to vector<4x4x19xf32>
    %c0_8 = arith.constant 0 : index
    %c19 = arith.constant 19 : index
    %c0_9 = arith.constant 0 : index
    %7 = vector.load %arg2[%c0_8, %c19, %c0_9] : memref<4x23x19xf32, #tpu.memory_space<vmem>>, vector<4x4x19xf32>
    tpu.vector_store %arg2[%c0_8, %c19, %c0_9], %6 {strides = array<i32>} : memref<4x23x19xf32, #tpu.memory_space<vmem>>, vector<4x4x19xf32>,
    %c0_10 = arith.constant 0 : index
    %c3 = arith.constant 3 : index
    %c0_11 = arith.constant 0 : index
    %8 = vector.load %arg2[%c0_10, %c3, %c0_11] : memref<4x23x19xf32, #tpu.memory_space<vmem>>, vector<4x16x19xf32>
    tpu.vector_store %arg2[%c0_10, %c3, %c0_11], %3 {strides = array<i32>} : memref<4x23x19xf32, #tpu.memory_space<vmem>>, vector<4x16x19xf32>,
    return
  }
  func.func @transform_0(%arg0: i32) -> (i32, i32, i32) {
    %c0_i32 = arith.constant 0 : i32
    %c0_i32_0 = arith.constant 0 : i32
    %c0_i32_1 = arith.constant 0 : i32
    return %arg0, %c0_i32, %c0_i32_0 : i32, i32, i32
  }
  func.func @transform_1(%arg0: i32) -> (i32, i32, i32) {
    %c0_i32 = arith.constant 0 : i32
    %c0_i32_0 = arith.constant 0 : i32
    %c0_i32_1 = arith.constant 0 : i32
    return %arg0, %c0_i32, %c0_i32_0 : i32, i32, i32
  }
}

</mosaic_0001>

<bundles_post_ra>
// kernel: tpu_custom_call.1
= control target key start
LH: loop header
LB: loop body
LE: loop exit
PB: predicated region body
PF: predicated region fallthrough
CT: control target
= control target key end

     0   :  { %6 = vsyncpa [#allocation3], 0  ;;  %s563_s0 = inlined_call_operand.hbm [shape: f32[8,16,16], index: 0, kind: input, shape index: {}]   ;;  %s564_s1 = inlined_call_operand.vmem [shape: f32[8,23,19], index: 1, kind: output, shape index: {}]  }
   0x1   :  { %8 = vsyncpa [#allocation3 + $0x1], 0  ;;  %s430_s6 = smov 0   ;;  %s432_s7 = smov 0  }
   0x2   :  { %s434_s8 = smov 0   ;;  %s436_s9 = smov 0  }
   0x3 LB: > { %s290_s10 = sadd.s32 4294967295, %s414_s9   ;;  %s450_s11 = sadd.s32 1, %s414_s9   ;;  %s414_s9 = sphi %s436_s9, %s571_s9   ;;  %s410_s8 = sphi %s434_s8, %s570_s8   ;;  %s406_s7 = sphi %s432_s7, %s569_s7   ;;  %s402_s6 = sphi %s430_s6, %s568_s6  }
   0x4   : > { %s18_s12 = ssub.s32 %s414_s9, %s450_s11  ;;  %s21_s13 = sadd.s32 1, %s410_s8 }
   0x5   : > { %p19_p0 = scmp.eq.s32.totalorder %s18_s12, 0  ;;  %p28_p1 = scmp.ne.s32.totalorder %s410_s8, %s406_s7 }
   0x6   : > { %p29_p2 = scmp.eq.s32.totalorder %s414_s9, 0  ;;  %p34_p3 = scmp.ne.s32.totalorder %s406_s7, %s402_s6 }
   0x7   : > { %s460_s14 = scalar_select %p19_p0, %s410_s8, %s21_s13  }
   0x8   : > { %p462_p4 = por %p29_p2, %p28_p1  ;;  %p35_p5 = scmp.eq.s32.totalorder %s290_s10, 0 }
   0x9   : > { %p313_p6 = scmp.lt.s32.totalorder %s414_s9, 2  ;;  %s84_s17 = sand.u32 1, %s410_s8  }
   0xa   : > { %p469_p7 = por %p35_p5, %p34_p3  ;;  %s294_s18 = sshll.u32 %s84_s17, 6 }
   0xb   : > { %s305_s19 = sshll.u32 %s414_s9, 6  ;;  %s88_s23 = scalar_lea.vmem [#allocation2], %s294_s18 }
   0xc   : > { %s94_s22 = scalar_lea.hbm %s563_s0, %s305_s19  ;;  %s97_s24 = sshll.u32 %s88_s23, 4  ;;  %s98_s24 = int_to_ptr.vmem [resolvable:$true] %s97_s24 }
   0xd   : > { %s95_s25 = sshll.u32 %s94_s22, 4  ;;  %p480_p8 = pnand %p313_p6, %p462_p4  ;;  %s96_s25 = int_to_ptr.hbm [resolvable:$true] %s95_s25 }
   0xe   : > { %p298_p9 = scmp.ge.s32.totalorder %s414_s9, 1  ;;  %s85_s27 = scalar_lea.sflag [#allocation3], %s84_s17 }
   0xf   : > { %s350_s28 = sshra.s32 %s96_s25, 4  ;;  %p354_p11 = pneg %p480_p8  ;;  %s351_s28 = int_to_ptr.hbm [resolvable:$true] %s350_s28 }
  0x10   : > { %s352_s29 = scalar_lea.hbm %s351_s28, 64  ;;  %s357_s3 = scalar_lea.hbm %s563_s0, 128 }
  0x11   : > { %p353_p10 = scmp.ne.s32.totalorder %s351_s28, %s352_s29  ;;  %p358_p0 = scmp.lt.s32.totalorder %s351_s28, %s563_s0 }
  0x12   : > { %p359_p1 = scmp.lt.s32.totalorder %s357_s3, %s352_s29 }
  0x13   : > { %p355_p12 = pnand %p354_p11, %p353_p10 }
  0x14   : > { %p360_p2 = por %p359_p1, %p358_p0 }
  0x15   : > { %p356_p13 = pneg %p355_p12 }
  0x17   : > { %p361_p3 = pnand %p360_p2, %p356_p13 }
  0x19   : > { %364 = shalt.err (!%p361_p3)
}
  0x1a   : > { %s416_s6 = smov 128   ;;  %s417_s12 = smov 8  }
  0x1b   : > { %312 = dma.hbm_to_vmem [thread:$0]  (!%p480_p8), %s96_s25, 1024, %s98_s24, %s85_s27, %s416_s6, %s416_s6, %s417_s12  }
  0x1c   : > { %p105_p4 = scmp.lt.s32.totalorder %s414_s9, 3 }
  0x1e   : > { %p106_p5 = pnand %p298_p9, %p105_p4 }
  0x1f   : > { %s111_s13 = sand.u32 (!%p106_p5), 1, %s406_s7  }
  0x20   : > { %109 = sbr.rel (%p106_p5) target bundleno = 174 (0xae), region = 24  ;;  %s299_s15 = sshll.u32 (!%p106_p5), %s111_s13, 6 }
  0x21   : > { %s112_s17 = scalar_lea.sflag (!%p106_p5), [#allocation3], %s111_s13  ;;  %s115_s18 = scalar_lea.vmem (!%p106_p5), [#allocation2], %s299_s15 }
  0x25   : > { %397 = dma.done.wait (%p469_p7), %s112_s17, 1024  }
  0x26   : > { %399 = vsyncadd (%p469_p7), %s112_s17, 4294966272  ;;  %v146_v0 = vld [vmem:[%s115_s18 + $0x10] sm:$0xff]  ;;  %v144_v1 = vld [vmem:[%s115_s18] sm:$0xff]  ;;  %s418_s19 = smov 1   ;;  %s300_s16 = sshll.u32 %s290_s10, 2  ;;  %vm202_vm0 = vcmask 149504  }
  0x27   : > { %164 = vrot.lane.b32.xlu1 %v146_v0, %s418_s19  ;;  %160 = vrot.lane.b32.xlu0 %v144_v1, %s418_s19  ;;  %v148_v2 = vld [vmem:[%s115_s18 + $0x20] sm:$0xff]  ;;  %v147_v3 = vld [vmem:[%s115_s18 + $0x18] sm:$0xff]  ;;  %p138_p6 = scmp.lt.s32.totalorder %s300_s16, 7  ;;  %v419_v8 = vmov 1.5   ;;  %vm207_vm1 = vcmask 150528   ;;  %vm184_vm2 = vcmask 7168  }
  0x28   : > { %168 = vrot.lane.b32.xlu2 %v148_v2, %s418_s19  ;;  %v145_v4 = vld [vmem:[%s115_s18 + $0x8] sm:$0xff]  ;;  %v151_v6 = vld [vmem:[%s115_s18 + $0x38] sm:$0xff]  ;;  %v150_v7 = vld [vmem:[%s115_s18 + $0x30] sm:$0xff]  ;;  %vm193_vm3 = vcmask 138240   ;;  %vm212_vm4 = vcmask 154624  }
  0x29   : > { %v149_v5 = vld [vmem:[%s115_s18 + $0x28] sm:$0xff]  ;;  %s573_s16 = smov (!%p138_p6, %s300_s16), 7 }
  0x2a   : > { %s306_s20 = smul.u32 24, %s573_s16 }
  0x2c   : > { %s508_s23 = scalar_lea.vmem %s564_s1, %s306_s20 }
  0x2d   : > { %203 = vst.msk [vmem:[%s508_s23] sm:$0x7] %vm202_vm0, %v419_v8 }
  0x2e   : > { %204 = vst.msk [vmem:[%s508_s23 + $0x18] sm:$0x7] %vm202_vm0, %v419_v8 }
  0x2f   : > { %166 = vrot.lane.b32.xlu1 %v147_v3, %s418_s19  ;;  %162 = vrot.lane.b32.xlu0 %v145_v4, %s418_s19  ;;  %205 = vst.msk [vmem:[%s508_s23 + $0x30] sm:$0x7] %vm202_vm0, %v419_v8 }
  0x30   : > { %170 = vrot.lane.b32.xlu2 %v149_v5, %s418_s19  ;;  %206 = vst.msk [vmem:[%s508_s23 + $0x48] sm:$0x7] %vm202_vm0, %v419_v8 }
  0x31   : > { %208 = vst.msk [vmem:[%s508_s23 + $0x13] sm:$0xf] %vm207_vm1, %v419_v8 }
  0x32   : > { %209 = vst.msk [vmem:[%s508_s23 + $0x2b] sm:$0xf] %vm207_vm1, %v419_v8 }
  0x33   : > { %210 = vst.msk [vmem:[%s508_s23 + $0x43] sm:$0xf] %vm207_vm1, %v419_v8 }
  0x34   : > { %211 = vst.msk [vmem:[%s508_s23 + $0x5b] sm:$0xf] %vm207_vm1, %v419_v8 }
  0x37   : > { %174 = vrot.lane.b32.xlu1 %v151_v6, %s418_s19  ;;  %172 = vrot.lane.b32.xlu0 %v150_v7, %s418_s19 }
  0x82   : > { %v169_v9 = vpop.permute.xlu2 %168 }
  0x83   : > { %v189_v10 = vsel %vm184_vm2, 1.5, %v169_v9 }
  0x84   : > { %v198_v17 = vsel %vm193_vm3, %v189_v10, 1.5 }
  0x85   : > { %217 = vst.msk [vmem:[%s508_s23 + $0x33] sm:$0xff] %vm212_vm4, %v198_v17 }
  0x8a   : > { %v171_v18 = vpop.permute.xlu2 %170 }
  0x8b   : > { %v190_v19 = vsel %vm184_vm2, 1.5, %v171_v18 }
  0x8c   : > { %v199_v26 = vsel %vm193_vm3, %v190_v19, 1.5 }
  0x8d   : > { %218 = vst.msk [vmem:[%s508_s23 + $0x3b] sm:$0xff] %vm212_vm4, %v199_v26 }
  0x99   : > { %v165_v11 = vpop.permute.xlu1 %164  ;;  %v161_v12 = vpop.permute.xlu0 %160 }
  0x9a   : > { %v187_v13 = vsel %vm184_vm2, 1.5, %v165_v11  ;;  %v185_v14 = vsel %vm184_vm2, 1.5, %v161_v12 }
  0x9b   : > { %v196_v15 = vsel %vm193_vm3, %v187_v13, 1.5  ;;  %v194_v16 = vsel %vm193_vm3, %v185_v14, 1.5 }
  0x9c   : > { %213 = vst.msk [vmem:[%s508_s23 + $0x3] sm:$0xff] %vm212_vm4, %v194_v16 }
  0x9d   : > { %215 = vst.msk [vmem:[%s508_s23 + $0x1b] sm:$0xff] %vm212_vm4, %v196_v15 }
  0xa1   : > { %v167_v20 = vpop.permute.xlu1 %166  ;;  %v163_v21 = vpop.permute.xlu0 %162 }
  0xa2   : > { %v188_v22 = vsel %vm184_vm2, 1.5, %v167_v20  ;;  %v186_v23 = vsel %vm184_vm2, 1.5, %v163_v21 }
  0xa3   : > { %v197_v24 = vsel %vm193_vm3, %v188_v22, 1.5  ;;  %v195_v25 = vsel %vm193_vm3, %v186_v23, 1.5 }
  0xa4   : > { %214 = vst.msk [vmem:[%s508_s23 + $0xb] sm:$0xff] %vm212_vm4, %v195_v25 }
  0xa5   : > { %216 = vst.msk [vmem:[%s508_s23 + $0x23] sm:$0xff] %vm212_vm4, %v197_v24 }
  0xa9   : > { %v175_v27 = vpop.permute.xlu1 %174  ;;  %v173_v28 = vpop.permute.xlu0 %172 }
  0xaa   : > { %v192_v29 = vsel %vm184_vm2, 1.5, %v175_v27  ;;  %v191_v30 = vsel %vm184_vm2, 1.5, %v173_v28 }
  0xab   : > { %v201_v31 = vsel %vm193_vm3, %v192_v29, 1.5  ;;  %v200_v32 = vsel %vm193_vm3, %v191_v30, 1.5 }
  0xac   : > { %220 = vst.msk [vmem:[%s508_s23 + $0x53] sm:$0xff] %vm212_vm4, %v201_v31 }
  0xad   : > { %219 = vst.msk [vmem:[%s508_s23 + $0x4b] sm:$0xff] %vm212_vm4, %v200_v32 }
  0xae PF: > { %p11_p7 = scmp.ge.s32.totalorder %s450_s11, 4   ;;  %s568_s6 = smov %s406_s7 }
  0xaf   : > { %s569_s7 = smov %s410_s8  ;;  %s570_s8 = smov %s460_s14 }
  0xb0   : > { %s571_s9 = smov %s450_s11  ;;  %13 = sbr.rel (!%p11_p7) target bundleno = 3 (0x3), region = 64 }
  0xb5   :  { %245 = vsyncpa [#allocation3], 1 }
  0xb6   :  { %247 = vsyncpa [#allocation3 + $0x1], 1 }

</bundles_post_ra>
